<compile_context>
chip_gen: v6e
topology: v6e:2x2x1
jax: 0.10.0
libtpu: 0.0.40
codegen_flags: <defaults>
</compile_context>

<pallas_src>
import functools
import math

import jax
import jax.numpy as jnp
from jax import lax
from jax.experimental import pallas as pl
from jax.experimental.pallas import tpu as pltpu


_I32_MAX = 0x7FFFFFFF
_I32_MIN = -0x80000000


def _round_up(x: int, m: int) -> int:
    return ((x + m - 1) // m) * m


def _topk_kernel(x_ref, vals_ref, idx_ref, key_ref, *, k: int, mode: str):
    # x_ref: (tm, D) input tile; vals_ref/idx_ref: (tm, kp) lane-dense outputs;
    # key_ref: (tm, D) int32 VMEM scratch (in-place working state).
    x = x_ref[...]
    tm, D = x.shape
    col = lax.broadcasted_iota(jnp.int32, (tm, D), dimension=1)
    taken = jnp.int32(_I32_MIN)  # unreachable key value -> safe "taken" mark

    # ---- key construction (fused with pass 0, never stored un-masked) ----
    if mode == "bf16_packed":
        # 16-bit sortable value key in the high half, (D-1-col) in the low
        # half -> one max reduce per pass selects value AND index.
        xf = x.astype(jnp.float32)                      # exact for bf16
        bits = lax.bitcast_convert_type(xf, jnp.int32)
        hi = bits >> 16                                 # sign-extended bf16 bits
        key16 = jnp.where(hi >= 0, hi, hi ^ jnp.int32(0x7FFF))
        key16 = jnp.where(xf != xf, jnp.int32(0x7FFF), key16)  # NaN -> largest
        key = (key16 << 16) | (jnp.int32(D - 1) - col)
    elif mode == "int":
        key = x.astype(jnp.int32)                       # exact for signed ints
    else:  # "float"
        xf = x.astype(jnp.float32)
        bits = lax.bitcast_convert_type(xf, jnp.int32)
        key = jnp.where(bits >= 0, bits, bits ^ jnp.int32(_I32_MAX))
        key = jnp.where(xf != xf, jnp.int32(_I32_MAX), key)    # NaN -> largest

    # k is small & static -> unrolled Python loop (LLO-visible, no dyn stores).
    kcur = key
    for j in range(k):
        if j > 0:
            kcur = key_ref[...]
        best = jnp.max(kcur, axis=-1, keepdims=True)              # (tm, 1)

        if mode == "bf16_packed":
            sel = jnp.int32(D - 1) - (best & jnp.int32(0xFFFF))   # (tm, 1)
            k16 = best >> 16
            vb = jnp.where(k16 >= 0, k16, k16 ^ jnp.int32(0x7FFF)) << 16
            v = lax.bitcast_convert_type(vb, jnp.float32)         # exact bf16
        elif mode == "int":
            sel = jnp.min(jnp.where(kcur == best, col, jnp.int32(D)),
                          axis=-1, keepdims=True)
            v = best
        else:
            sel = jnp.min(jnp.where(kcur == best, col, jnp.int32(D)),
                          axis=-1, keepdims=True)
            vbits = jnp.where(best >= 0, best, best ^ jnp.int32(_I32_MAX))
            v = lax.bitcast_convert_type(vbits, jnp.float32)

        # Static column stores: no (tm, kp) accumulators, no lane==j selects.
        vals_ref[:, j:j + 1] = v.astype(vals_ref.dtype)
        idx_ref[:, j:j + 1] = sel

        # Mask exactly the selected position for the next pass; skip the last.
        if j < k - 1:
            key_ref[...] = jnp.where(col == sel, taken, kcur)


def topk(x: jax.Array, k: int, *, tm: int = 256):
    """Top-k along the last dim. Returns (values, indices) like
    torch.topk(..., sorted=False) (values come out in descending order)."""
    orig_shape = x.shape
    D = orig_shape[-1]
    assert 1 <= k <= D, "k must satisfy 1 <= k <= last-dim size"
    rows = math.prod(orig_shape[:-1])
    x2 = x.reshape(rows, D)

    dtype = x2.dtype
    if dtype == jnp.bfloat16 and D <= 65536:
        mode = "bf16_packed"
    elif jnp.issubdtype(dtype, jnp.signedinteger) and dtype.itemsize <= 4:
        mode = "int"
    else:
        mode = "float"

    kp = _round_up(k, 128)  # lane-dense output width
    in_itemsize = dtype.itemsize
    out_itemsize = in_itemsize
    sub = max(8, 32 // in_itemsize)  # dtype-aware sublane multiple

    # Chip-aware VMEM budget (v7x has 64 MiB/TC; v5e/v6e have 128 MiB).
    try:
        vmem_cap = int(pltpu.get_tpu_info().vmem_capacity_bytes)
    except Exception:
        vmem_cap = 64 * 1024 * 1024  # conservative (v7x-safe) fallback
    if vmem_cap <= 64 * 1024 * 1024:
        budget, vmem_limit = 24 << 20, 32 << 20
    else:
        budget, vmem_limit = 48 << 20, 64 << 20

    def _footprint(t):
        inp = 2 * t * D * in_itemsize            # double-buffered input tile
        scratch = t * D * 4                      # int32 key scratch
        outs = 2 * t * kp * (out_itemsize + 4)   # double-buffered vals + idx
        return inp + scratch + outs

    # At least 2 grid steps when rows allow (v7x dual-TC), tile multiple of sub.
    tm_eff = min(tm, max(sub, _round_up(-(-rows // 2), sub)))
    tm_eff = max(sub, _round_up(tm_eff, sub))
    while tm_eff > sub and _footprint(tm_eff) > budget:
        tm_eff = max(sub, _round_up(tm_eff // 2, sub))

    padded_rows = _round_up(rows, tm_eff)
    if padded_rows != rows:
        x2 = jnp.pad(x2, ((0, padded_rows - rows), (0, 0)))
    grid = (padded_rows // tm_eff,)

    kernel = functools.partial(_topk_kernel, k=k, mode=mode)
    vals_p, idx_p = pl.pallas_call(
        kernel,
        out_shape=(
            jax.ShapeDtypeStruct((padded_rows, kp), x.dtype),
            jax.ShapeDtypeStruct((padded_rows, kp), jnp.int32),
        ),
        grid_spec=pltpu.PrefetchScalarGridSpec(
            num_scalar_prefetch=0,
            grid=grid,
            in_specs=[pl.BlockSpec((tm_eff, D), lambda i: (i, 0))],
            out_specs=[
                pl.BlockSpec((tm_eff, kp), lambda i: (i, 0)),
                pl.BlockSpec((tm_eff, kp), lambda i: (i, 0)),
            ],
            scratch_shapes=[pltpu.VMEM((tm_eff, D), jnp.int32)],
        ),
        compiler_params=pltpu.CompilerParams(
            dimension_semantics=("parallel",),
            vmem_limit_bytes=vmem_limit,
        ),
    )(x2)

    vals = vals_p[:rows, :k].reshape(*orig_shape[:-1], k)
    idx = idx_p[:rows, :k].reshape(*orig_shape[:-1], k)
    return vals, idx


if __name__ == "__main__":
    key = jax.random.PRNGKey(0)
    k1, k2, k3 = jax.random.split(key, 3)

    # --- f32, SAE-style activation (batch, seq, hidden) ---
    x = jax.random.normal(k1, (2, 8, 32), dtype=jnp.float32)
    k = 4
    vals, idx = topk(x, k)
    jax.block_until_ready((vals, idx))
    ref_vals, ref_idx = jax.lax.top_k(x, k)
    assert vals.shape == (2, 8, k) and idx.shape == (2, 8, k)
    assert jnp.allclose(vals, ref_vals), "f32 values mismatch"
    assert jnp.all(idx == ref_idx), "f32 indices mismatch"

    # --- bf16 packed-key fast path ---
    xb = jax.random.normal(k2, (2, 8, 32), dtype=jnp.float32).astype(jnp.bfloat16)
    vb, ib = topk(xb, k)
    jax.block_until_ready((vb, ib))
    rvb, _ = jax.lax.top_k(xb, k)
    assert jnp.all(vb == rvb), "bf16 values mismatch"
    gathered = jnp.take_along_axis(xb, ib, axis=-1)
    assert jnp.all(gathered == vb), "bf16 indices do not select returned values"

    # --- ragged shape (rows not multiple of tile, D not multiple of 128) ---
    xr = jax.random.normal(k3, (5, 33), dtype=jnp.float32)
    vr, ir = topk(xr, 3)
    jax.block_until_ready((vr, ir))
    rv, ri = jax.lax.top_k(xr, 3)
    assert jnp.allclose(vr, rv) and jnp.all(ir == ri), "ragged case mismatch"

    print("KERNEL_OK")
</pallas_src>

<mosaic_0001>
module attributes {stable_mosaic.version = 11 : i64} {
  func.func @_topk_kernel(%arg0: i32, %arg1: memref<8x32xf32, #tpu.memory_space<vmem>>, %arg2: memref<8x128xf32, #tpu.memory_space<vmem>>, %arg3: memref<8x128xi32, #tpu.memory_space<vmem>>, %arg4: memref<8x32xi32, #tpu.memory_space<vmem>>) attributes {dimension_semantics = [#tpu.dimension_semantics<parallel>], iteration_bounds = array<i64: 2>, scalar_prefetch = 0 : i64, scratch_operands = 1 : i64, tpu.core_type = #tpu.core_type<tc>, window_params = [{transform_indices = @transform_0, window_bounds = array<i64: 8, 32>}, {transform_indices = @transform_1, window_bounds = array<i64: 8, 128>}, {transform_indices = @transform_2, window_bounds = array<i64: 8, 128>}]} {
    %c0 = arith.constant 0 : index
    %c0_0 = arith.constant 0 : index
    %0 = vector.load %arg1[%c0, %c0_0] : memref<8x32xf32, #tpu.memory_space<vmem>>, vector<8x32xf32>
    %1 = tpu.iota {dimensions = array<i32: 1>} : vector<8x32xi32>
    %2 = tpu.bitcast %0 : vector<8x32xf32> -> vector<8x32xi32>
    %c0_i32 = arith.constant 0 : i32
    %3 = vector.broadcast %c0_i32 : i32 to vector<8x32xi32>
    %4 = arith.cmpi sge, %2, %3 : vector<8x32xi32>
    %c2147483647_i32 = arith.constant 2147483647 : i32
    %5 = vector.broadcast %c2147483647_i32 : i32 to vector<8x32xi32>
    %6 = arith.xori %2, %5 : vector<8x32xi32>
    %7 = arith.select %4, %2, %6 : vector<8x32xi1>, vector<8x32xi32>
    %8 = arith.cmpf one, %0, %0 : vector<8x32xf32>
    %c2147483647_i32_1 = arith.constant 2147483647 : i32
    %9 = vector.broadcast %c2147483647_i32_1 : i32 to vector<8x32xi32>
    %10 = arith.select %8, %9, %7 : vector<8x32xi1>, vector<8x32xi32>
    %cst = arith.constant dense<-2147483648> : vector<8xi32>
    %11 = vector.multi_reduction <maxsi>, %10, %cst [1] : vector<8x32xi32> to vector<8xi32>
    %12 = vector.shape_cast %11 : vector<8xi32> to vector<8x1xi32>
    %13 = vector.broadcast %12 : vector<8x1xi32> to vector<8x32xi32>
    %14 = arith.cmpi eq, %10, %13 : vector<8x32xi32>
    %c32_i32 = arith.constant 32 : i32
    %15 = vector.broadcast %c32_i32 : i32 to vector<8x32xi32>
    %16 = arith.select %14, %1, %15 : vector<8x32xi1>, vector<8x32xi32>
    %cst_2 = arith.constant dense<2147483647> : vector<8xi32>
    %17 = vector.multi_reduction <minsi>, %16, %cst_2 [1] : vector<8x32xi32> to vector<8xi32>
    %18 = vector.shape_cast %17 : vector<8xi32> to vector<8x1xi32>
    %c0_i32_3 = arith.constant 0 : i32
    %19 = vector.broadcast %c0_i32_3 : i32 to vector<8x1xi32>
    %20 = arith.cmpi sge, %12, %19 : vector<8x1xi32>
    %c2147483647_i32_4 = arith.constant 2147483647 : i32
    %21 = vector.broadcast %c2147483647_i32_4 : i32 to vector<8x1xi32>
    %22 = arith.xori %12, %21 : vector<8x1xi32>
    %23 = arith.select %20, %12, %22 : vector<8x1xi1>, vector<8x1xi32>
    %24 = tpu.bitcast %23 : vector<8x1xi32> -> vector<8x1xf32>
    %c0_5 = arith.constant 0 : index
    %c0_6 = arith.constant 0 : index
    %25 = vector.load %arg2[%c0_5, %c0_6] : memref<8x128xf32, #tpu.memory_space<vmem>>, vector<8x1xf32>
    tpu.vector_store %arg2[%c0_5, %c0_6], %24 {strides = array<i32>} : memref<8x128xf32, #tpu.memory_space<vmem>>, vector<8x1xf32>,
    %c0_7 = arith.constant 0 : index
    %c0_8 = arith.constant 0 : index
    %26 = vector.load %arg3[%c0_7, %c0_8] : memref<8x128xi32, #tpu.memory_space<vmem>>, vector<8x1xi32>
    tpu.vector_store %arg3[%c0_7, %c0_8], %18 {strides = array<i32>} : memref<8x128xi32, #tpu.memory_space<vmem>>, vector<8x1xi32>,
    %27 = vector.broadcast %18 : vector<8x1xi32> to vector<8x32xi32>
    %28 = arith.cmpi eq, %1, %27 : vector<8x32xi32>
    %c-2147483648_i32 = arith.constant -2147483648 : i32
    %29 = vector.broadcast %c-2147483648_i32 : i32 to vector<8x32xi32>
    %30 = arith.select %28, %29, %10 : vector<8x32xi1>, vector<8x32xi32>
    %c0_9 = arith.constant 0 : index
    %c0_10 = arith.constant 0 : index
    %31 = vector.load %arg4[%c0_9, %c0_10] : memref<8x32xi32, #tpu.memory_space<vmem>>, vector<8x32xi32>
    tpu.vector_store %arg4[%c0_9, %c0_10], %30 {strides = array<i32>} : memref<8x32xi32, #tpu.memory_space<vmem>>, vector<8x32xi32>,
    %c0_11 = arith.constant 0 : index
    %c0_12 = arith.constant 0 : index
    %32 = vector.load %arg4[%c0_11, %c0_12] : memref<8x32xi32, #tpu.memory_space<vmem>>, vector<8x32xi32>
    %cst_13 = arith.constant dense<-2147483648> : vector<8xi32>
    %33 = vector.multi_reduction <maxsi>, %32, %cst_13 [1] : vector<8x32xi32> to vector<8xi32>
    %34 = vector.shape_cast %33 : vector<8xi32> to vector<8x1xi32>
    %35 = vector.broadcast %34 : vector<8x1xi32> to vector<8x32xi32>
    %36 = arith.cmpi eq, %32, %35 : vector<8x32xi32>
    %c32_i32_14 = arith.constant 32 : i32
    %37 = vector.broadcast %c32_i32_14 : i32 to vector<8x32xi32>
    %38 = arith.select %36, %1, %37 : vector<8x32xi1>, vector<8x32xi32>
    %cst_15 = arith.constant dense<2147483647> : vector<8xi32>
    %39 = vector.multi_reduction <minsi>, %38, %cst_15 [1] : vector<8x32xi32> to vector<8xi32>
    %40 = vector.shape_cast %39 : vector<8xi32> to vector<8x1xi32>
    %c0_i32_16 = arith.constant 0 : i32
    %41 = vector.broadcast %c0_i32_16 : i32 to vector<8x1xi32>
    %42 = arith.cmpi sge, %34, %41 : vector<8x1xi32>
    %c2147483647_i32_17 = arith.constant 2147483647 : i32
    %43 = vector.broadcast %c2147483647_i32_17 : i32 to vector<8x1xi32>
    %44 = arith.xori %34, %43 : vector<8x1xi32>
    %45 = arith.select %42, %34, %44 : vector<8x1xi1>, vector<8x1xi32>
    %46 = tpu.bitcast %45 : vector<8x1xi32> -> vector<8x1xf32>
    %c0_18 = arith.constant 0 : index
    %c1 = arith.constant 1 : index
    %47 = vector.load %arg2[%c0_18, %c1] : memref<8x128xf32, #tpu.memory_space<vmem>>, vector<8x1xf32>
    tpu.vector_store %arg2[%c0_18, %c1], %46 {strides = array<i32>} : memref<8x128xf32, #tpu.memory_space<vmem>>, vector<8x1xf32>,
    %c0_19 = arith.constant 0 : index
    %c1_20 = arith.constant 1 : index
    %48 = vector.load %arg3[%c0_19, %c1_20] : memref<8x128xi32, #tpu.memory_space<vmem>>, vector<8x1xi32>
    tpu.vector_store %arg3[%c0_19, %c1_20], %40 {strides = array<i32>} : memref<8x128xi32, #tpu.memory_space<vmem>>, vector<8x1xi32>,
    %49 = vector.broadcast %40 : vector<8x1xi32> to vector<8x32xi32>
    %50 = arith.cmpi eq, %1, %49 : vector<8x32xi32>
    %c-2147483648_i32_21 = arith.constant -2147483648 : i32
    %51 = vector.broadcast %c-2147483648_i32_21 : i32 to vector<8x32xi32>
    %52 = arith.select %50, %51, %32 : vector<8x32xi1>, vector<8x32xi32>
    %c0_22 = arith.constant 0 : index
    %c0_23 = arith.constant 0 : index
    %53 = vector.load %arg4[%c0_22, %c0_23] : memref<8x32xi32, #tpu.memory_space<vmem>>, vector<8x32xi32>
    tpu.vector_store %arg4[%c0_22, %c0_23], %52 {strides = array<i32>} : memref<8x32xi32, #tpu.memory_space<vmem>>, vector<8x32xi32>,
    %c0_24 = arith.constant 0 : index
    %c0_25 = arith.constant 0 : index
    %54 = vector.load %arg4[%c0_24, %c0_25] : memref<8x32xi32, #tpu.memory_space<vmem>>, vector<8x32xi32>
    %cst_26 = arith.constant dense<-2147483648> : vector<8xi32>
    %55 = vector.multi_reduction <maxsi>, %54, %cst_26 [1] : vector<8x32xi32> to vector<8xi32>
    %56 = vector.shape_cast %55 : vector<8xi32> to vector<8x1xi32>
    %57 = vector.broadcast %56 : vector<8x1xi32> to vector<8x32xi32>
    %58 = arith.cmpi eq, %54, %57 : vector<8x32xi32>
    %c32_i32_27 = arith.constant 32 : i32
    %59 = vector.broadcast %c32_i32_27 : i32 to vector<8x32xi32>
    %60 = arith.select %58, %1, %59 : vector<8x32xi1>, vector<8x32xi32>
    %cst_28 = arith.constant dense<2147483647> : vector<8xi32>
    %61 = vector.multi_reduction <minsi>, %60, %cst_28 [1] : vector<8x32xi32> to vector<8xi32>
    %62 = vector.shape_cast %61 : vector<8xi32> to vector<8x1xi32>
    %c0_i32_29 = arith.constant 0 : i32
    %63 = vector.broadcast %c0_i32_29 : i32 to vector<8x1xi32>
    %64 = arith.cmpi sge, %56, %63 : vector<8x1xi32>
    %c2147483647_i32_30 = arith.constant 2147483647 : i32
    %65 = vector.broadcast %c2147483647_i32_30 : i32 to vector<8x1xi32>
    %66 = arith.xori %56, %65 : vector<8x1xi32>
    %67 = arith.select %64, %56, %66 : vector<8x1xi1>, vector<8x1xi32>
    %68 = tpu.bitcast %67 : vector<8x1xi32> -> vector<8x1xf32>
    %c0_31 = arith.constant 0 : index
    %c2 = arith.constant 2 : index
    %69 = vector.load %arg2[%c0_31, %c2] : memref<8x128xf32, #tpu.memory_space<vmem>>, vector<8x1xf32>
    tpu.vector_store %arg2[%c0_31, %c2], %68 {strides = array<i32>} : memref<8x128xf32, #tpu.memory_space<vmem>>, vector<8x1xf32>,
    %c0_32 = arith.constant 0 : index
    %c2_33 = arith.constant 2 : index
    %70 = vector.load %arg3[%c0_32, %c2_33] : memref<8x128xi32, #tpu.memory_space<vmem>>, vector<8x1xi32>
    tpu.vector_store %arg3[%c0_32, %c2_33], %62 {strides = array<i32>} : memref<8x128xi32, #tpu.memory_space<vmem>>, vector<8x1xi32>,
    %71 = vector.broadcast %62 : vector<8x1xi32> to vector<8x32xi32>
    %72 = arith.cmpi eq, %1, %71 : vector<8x32xi32>
    %c-2147483648_i32_34 = arith.constant -2147483648 : i32
    %73 = vector.broadcast %c-2147483648_i32_34 : i32 to vector<8x32xi32>
    %74 = arith.select %72, %73, %54 : vector<8x32xi1>, vector<8x32xi32>
    %c0_35 = arith.constant 0 : index
    %c0_36 = arith.constant 0 : index
    %75 = vector.load %arg4[%c0_35, %c0_36] : memref<8x32xi32, #tpu.memory_space<vmem>>, vector<8x32xi32>
    tpu.vector_store %arg4[%c0_35, %c0_36], %74 {strides = array<i32>} : memref<8x32xi32, #tpu.memory_space<vmem>>, vector<8x32xi32>,
    %c0_37 = arith.constant 0 : index
    %c0_38 = arith.constant 0 : index
    %76 = vector.load %arg4[%c0_37, %c0_38] : memref<8x32xi32, #tpu.memory_space<vmem>>, vector<8x32xi32>
    %cst_39 = arith.constant dense<-2147483648> : vector<8xi32>
    %77 = vector.multi_reduction <maxsi>, %76, %cst_39 [1] : vector<8x32xi32> to vector<8xi32>
    %78 = vector.shape_cast %77 : vector<8xi32> to vector<8x1xi32>
    %79 = vector.broadcast %78 : vector<8x1xi32> to vector<8x32xi32>
    %80 = arith.cmpi eq, %76, %79 : vector<8x32xi32>
    %c32_i32_40 = arith.constant 32 : i32
    %81 = vector.broadcast %c32_i32_40 : i32 to vector<8x32xi32>
    %82 = arith.select %80, %1, %81 : vector<8x32xi1>, vector<8x32xi32>
    %cst_41 = arith.constant dense<2147483647> : vector<8xi32>
    %83 = vector.multi_reduction <minsi>, %82, %cst_41 [1] : vector<8x32xi32> to vector<8xi32>
    %84 = vector.shape_cast %83 : vector<8xi32> to vector<8x1xi32>
    %c0_i32_42 = arith.constant 0 : i32
    %85 = vector.broadcast %c0_i32_42 : i32 to vector<8x1xi32>
    %86 = arith.cmpi sge, %78, %85 : vector<8x1xi32>
    %c2147483647_i32_43 = arith.constant 2147483647 : i32
    %87 = vector.broadcast %c2147483647_i32_43 : i32 to vector<8x1xi32>
    %88 = arith.xori %78, %87 : vector<8x1xi32>
    %89 = arith.select %86, %78, %88 : vector<8x1xi1>, vector<8x1xi32>
    %90 = tpu.bitcast %89 : vector<8x1xi32> -> vector<8x1xf32>
    %c0_44 = arith.constant 0 : index
    %c3 = arith.constant 3 : index
    %91 = vector.load %arg2[%c0_44, %c3] : memref<8x128xf32, #tpu.memory_space<vmem>>, vector<8x1xf32>
    tpu.vector_store %arg2[%c0_44, %c3], %90 {strides = array<i32>} : memref<8x128xf32, #tpu.memory_space<vmem>>, vector<8x1xf32>,
    %c0_45 = arith.constant 0 : index
    %c3_46 = arith.constant 3 : index
    %92 = vector.load %arg3[%c0_45, %c3_46] : memref<8x128xi32, #tpu.memory_space<vmem>>, vector<8x1xi32>
    tpu.vector_store %arg3[%c0_45, %c3_46], %84 {strides = array<i32>} : memref<8x128xi32, #tpu.memory_space<vmem>>, vector<8x1xi32>,
    return
  }
  func.func @transform_0(%arg0: i32) -> (i32, i32) {
    %c0_i32 = arith.constant 0 : i32
    %c0_i32_0 = arith.constant 0 : i32
    return %arg0, %c0_i32 : i32, i32
  }
  func.func @transform_1(%arg0: i32) -> (i32, i32) {
    %c0_i32 = arith.constant 0 : i32
    %c0_i32_0 = arith.constant 0 : i32
    return %arg0, %c0_i32 : i32, i32
  }
  func.func @transform_2(%arg0: i32) -> (i32, i32) {
    %c0_i32 = arith.constant 0 : i32
    %c0_i32_0 = arith.constant 0 : i32
    return %arg0, %c0_i32 : i32, i32
  }
}

</mosaic_0001>

<bundles_post_ra>
// kernel: tpu_custom_call.1
= control target key start
LH: loop header
LB: loop body
LE: loop exit
PB: predicated region body
PF: predicated region fallthrough
CT: control target
= control target key end

     0   :  { %8 = vsyncpa [#allocation4], 0  ;;  %s898_s0 = inlined_call_operand.hbm [shape: f32[16,32], index: 0, kind: input, shape index: {}]   ;;  %s899_s1 = inlined_call_operand.hbm [shape: f32[16,128], index: 1, kind: output, shape index: {0}]   ;;  %s900_s2 = inlined_call_operand.hbm [shape: s32[16,128], index: 2, kind: output, shape index: {1}]  }
   0x1   :  { %10 = vsyncpa [#allocation4 + $0x1], 0 }
   0x2   :  { %11 = vsyncpa [#allocation5], 0 }
   0x3   :  { %13 = vsyncpa [#allocation5 + $0x1], 0 }
   0x4   :  { %14 = vsyncpa [#allocation8], 0 }
   0x5   :  { %16 = vsyncpa [#allocation8 + $0x1], 0  ;;  %s690_s9 = smov 0   ;;  %s692_s10 = smov 0  }
   0x6   :  { %s694_s11 = smov 0   ;;  %s696_s12 = smov 0  }
   0x7 LB: > { %s711_s13 = sadd.s32 4294967295, %s670_s12   ;;  %s482_s14 = sadd.s32 4294967294, %s670_s12   ;;  %s670_s12 = sphi %s696_s12, %s917_s12   ;;  %s666_s11 = sphi %s694_s11, %s916_s11   ;;  %s662_s10 = sphi %s692_s10, %s915_s10   ;;  %s658_s9 = sphi %s690_s9, %s914_s9  }
   0x8   : > { %s715_s15 = sadd.s32 1, %s670_s12   ;;  %s29_s16 = sadd.s32 1, %s666_s11 }
   0x9   : > { %s26_s17 = ssub.s32 %s670_s12, %s715_s15  ;;  %p36_p0 = scmp.ne.s32.totalorder %s666_s11, %s662_s10 }
   0xa   : > { %p27_p1 = scmp.eq.s32.totalorder %s26_s17, 0  ;;  %p37_p2 = scmp.eq.s32.totalorder %s670_s12, 0 }
   0xb   : > { %p42_p3 = scmp.ne.s32.totalorder %s662_s10, %s658_s9  ;;  %p43_p4 = scmp.eq.s32.totalorder %s711_s13, 0 }
   0xc   : > { %s727_s18 = scalar_select %p27_p1, %s666_s11, %s29_s16  }
   0xd   : > { %p729_p5 = por %p37_p2, %p36_p0  ;;  %p733_p6 = por %p43_p4, %p42_p3 }
   0xe   : > { %p66_p7 = scmp.eq.s32.totalorder %s711_s13, 1  ;;  %p72_p8 = scmp.eq.s32.totalorder %s482_s14, 1 }
   0xf   : > { %s904_s20 = scalar_select %p733_p6, 1, 0 }
  0x10   : > { %p514_p10 = scmp.lt.s32.totalorder %s670_s12, 2  ;;  %p740_p11 = por %p66_p7, %p36_p0 }
  0x11   : > { %p744_p12 = por %p72_p8, %p42_p3  ;;  %s118_s23 = sand.u32 1, %s666_s11  }
  0x12   : > { %s905_s21 = scalar_select %p740_p11, 1, 0 }
  0x13   : > { %s906_s22 = scalar_select %p744_p12, 1, 0 }
  0x14   : > { %s486_s24 = sshll.u32 %s670_s12, 7  ;;  %s485_s25 = sshll.u32 %s118_s23, 3 }
  0x15   : > { %s753_s28 = scalar_lea.hbm %s898_s0, %s486_s24  ;;  %s122_s29 = scalar_lea.vmem [#allocation3], %s485_s25 }
  0x16   : > { %s129_s30 = sshll.u32 %s122_s29, 4  ;;  %p757_p13 = pnand %p514_p10, %p729_p5  ;;  %s761_s30 = int_to_ptr.vmem [resolvable:$true] %s129_s30 }
  0x17   : > { %s119_s4 = scalar_lea.sflag [#allocation4], %s118_s23  ;;  %s548_s5 = scalar_lea.hbm %s753_s28, 128 }
  0x18   : > { %p549_p2 = scmp.ne.s32.totalorder %s753_s28, %s548_s5  ;;  %p550_p3 = pneg %p757_p13 }
  0x19   : > { %s553_s8 = scalar_lea.hbm %s898_s0, 256  ;;  %p554_p5 = scmp.lt.s32.totalorder %s753_s28, %s898_s0 }
  0x1a   : > { %p551_p4 = pnand %p550_p3, %p549_p2  ;;  %p555_p8 = scmp.lt.s32.totalorder %s553_s8, %s548_s5 }
  0x1c   : > { %p552_p7 = pneg %p551_p4  ;;  %p556_p10 = por %p555_p8, %p554_p5 }
  0x1e   : > { %p557_p9 = pnand %p556_p10, %p552_p7 }
  0x20   : > { %560 = shalt.err (!%p557_p9)
}
  0x21   : > { %s561_s17 = scalar_lea.vmem %s761_s30, 128  ;;  %s672_s19 = smov [#allocation3]  }
  0x22   : > { %p562_p0 = scmp.ne.s32.totalorder %s761_s30, %s561_s17  ;;  %s566_s23 = sshll.u32 %s672_s19, 4  ;;  %s567_s23 = int_to_ptr.vmem [resolvable:$false] %s566_s23 }
  0x23   : > { %s568_s24 = scalar_lea.vmem %s567_s23, 256  ;;  %p569_p4 = scmp.lt.s32.totalorder %s761_s30, %s567_s23 }
  0x24   : > { %p564_p1 = pnand %p562_p0, %p550_p3  ;;  %p570_p12 = scmp.lt.s32.totalorder %s568_s24, %s561_s17 }
  0x26   : > { %p565_p2 = pneg %p564_p1  ;;  %p571_p11 = por %p570_p12, %p569_p4 }
  0x28   : > { %p572_p6 = pnand %p571_p11, %p565_p2 }
  0x2a   : > { %575 = shalt.err (!%p572_p6)
}
  0x2b   : > { %506 = dma.hbm_to_vmem [thread:$0]  (!%p757_p13), %s753_s28, 128, %s761_s30, %s119_s4  }
  0x2c   : > { %p908_p9 = scmp.lt.s32.totalorder %s670_s12, 3  ;;  %p909_p7 = scmp.ge.s32.totalorder %s670_s12, 1 }
  0x2e   : > { %p135_p0 = pnand %p909_p7, %p908_p9 }
  0x2f   : > { %s788_s25 = sand.u32 (!%p135_p0), 1, %s662_s10   ;;  %p910_p6 = scmp.ne.s32.totalorder (!%p135_p0), %s904_s20, 0 }
  0x30   : > { %138 = sbr.rel (%p135_p0) target bundleno = 2406 (0x966), region = 24  ;;  %s791_s26 = sshll.u32 (!%p135_p0), %s788_s25, 3 }
  0x31   : > { %s141_s27 = scalar_lea.sflag (!%p135_p0), [#allocation4], %s788_s25  ;;  %s144_s29 = scalar_lea.vmem (!%p135_p0), [#allocation3], %s791_s26 }
  0x35   : > { %645 = dma.done.wait (%p910_p6), %s141_s27, 128  }
  0x36   : > { %647 = vsyncadd (%p910_p6), %s141_s27, 4294967168  ;;  %v170_v0 = vld [vmem:[%s144_s29] sm:$0xff]  ;;  %vm179_vm2 = vcmask 261120   ;;  %v171_v12 = vlaneseq  ;;  %vm216_vm6 = vcmask 7168   ;;  %s805_s20 = scalar_lea.vmem [#allocation6], %s791_s26  ;;  %s810_s28 = scalar_lea.vmem [#allocation7], %s791_s26 }
  0x37   : > { %vm174_vm0 = vcmp.ge.s32.totalorder %v170_v0, 0  ;;  %v175_v1 = vxor.u32 2147483647, %v170_v0  ;;  %vm177_vm1 = vcmp.ne.f32.partialorder %v170_v0, %v170_v0  ;;  %vm259_vm12 = vcmask 15368   ;;  %s493_s30 = sshll.u32 %s711_s13, 7  ;;  %s367_s6 = sshll.u32 %s805_s20, 4  ;;  %s368_s6 = int_to_ptr.vmem [resolvable:$true] %s367_s6 }
  0x38   : > { %v800_v16 = vand.u32 127, %v171_v12  ;;  %s365_s5 = scalar_lea.hbm %s899_s1, %s493_s30  ;;  %s349_s7 = scalar_lea.sflag [#allocation5], %s788_s25 }
  0x39   : > { %v176_v2 = vsel %vm174_vm0, %v170_v0, %v175_v1  ;;  %s576_s8 = scalar_lea.vmem %s368_s6, 128  ;;  %p911_p12 = scmp.ne.s32.totalorder %s905_s21, 0 }
  0x3a   : > { %v178_v3 = vsel %vm177_vm1, 2147483647, %v176_v2  ;;  %p577_p11 = scmp.ne.s32.totalorder %s368_s6, %s576_s8  ;;  %s673_s14 = smov [#allocation6]  }
  0x3b   : > { %v180_v4 = vsel %vm179_vm2, %v178_v3, 2147483648  ;;  %s580_s16 = sshll.u32 %s673_s14, 4  ;;  %s581_s16 = int_to_ptr.vmem [resolvable:$false] %s580_s16 }
  0x3c   : > { %v182_v5 = vshra.s32 %v180_v4, 16  ;;  %v181_v7 = vand.u32 65535, %v180_v4  ;;  %p578_p13 = pnand %p577_p11, %p911_p12  ;;  %s582_s17 = scalar_lea.vmem %s581_s16, 256 }
  0x3d   : > { %p583_p3 = scmp.lt.s32.totalorder %s368_s6, %s581_s16  ;;  %p584_p5 = scmp.lt.s32.totalorder %s582_s17, %s576_s8 }
  0x3e   : > { %v184_v6 = vcvt.s32.f32 %v182_v5  ;;  %v183_v8 = vcvt.s32.f32 %v181_v7  ;;  %p579_p1 = pneg %p578_p13 }
  0x3f   : > { %p585_p8 = por %p584_p5, %p583_p3 }
  0x40   : > { %185 = vmax.xlane.f32.xlu0 %v184_v6 }
  0x41   : > { %p586_p10 = pnand %p585_p8, %p579_p1 }
  0xc9   : > { %v186_v9 = vpop.xlane.xlu0 %185 }
  0xca   : > { %vm187_vm3 = vcmp.eq.f32.partialorder %v184_v6, %v186_v9  ;;  %v192_v11 = vcvt.f32.s32 %v186_v9 }
  0xcb   : > { %v188_v10 = vsel %vm187_vm3, %v183_v8, -inf  ;;  %vm302_vm3 = vcmask 23568  }
  0xcc   : > { %189 = vmax.xlane.f32.xlu0 %v188_v10  ;;  %v193_v14 = vshll.u32 %v192_v11, 16 }
 0x155   : > { %v190_v13 = vpop.xlane.xlu0 %189 }
 0x156   : > { %v191_v15 = vcvt.f32.s32 %v190_v13 }
 0x158   : > { %v194_v17 = vadd.s32 %v193_v14, %v191_v15 }
 0x15a   : > { %vm212_vm4 = vcmp.ge.s32.totalorder %v194_v17, 0  ;;  %v213_v18 = vxor.u32 2147483647, %v194_v17  ;;  %vm195_vm5 = vcmp.eq.s32.totalorder %v178_v3, %v194_v17 }
 0x15b   : > { %v196_v19 = vsel %vm195_vm5, %v800_v16, 32 }
 0x15c   : > { %v214_v20 = vsel %vm212_vm4, %v194_v17, %v213_v18  ;;  %v197_v21 = vsel %vm179_vm2, %v196_v19, 2147483647 }
 0x15d   : > { %v199_v22 = vshra.s32 %v197_v21, 16  ;;  %217 = vst.msk [vmem:[%s805_s20] sm:$0xff] %vm216_vm6, %v214_v20  ;;  %v198_v24 = vand.u32 65535, %v197_v21 }
 0x15f   : > { %v201_v23 = vcvt.s32.f32 %v199_v22  ;;  %v200_v26 = vcvt.s32.f32 %v198_v24 }
 0x161   : > { %202 = vmin.xlane.f32.xlu1 %v201_v23 }
 0x1ea   : > { %v203_v25 = vpop.xlane.xlu1 %202 }
 0x1eb   : > { %vm204_vm7 = vcmp.eq.f32.partialorder %v201_v23, %v203_v25  ;;  %v209_v28 = vcvt.f32.s32 %v203_v25 }
 0x1ec   : > { %v205_v27 = vsel %vm204_vm7, %v200_v26, inf }
 0x1ed   : > { %206 = vmin.xlane.f32.xlu1 %v205_v27  ;;  %v210_v30 = vshll.u32 %v209_v28, 16 }
 0x276   : > { %v207_v29 = vpop.xlane.xlu1 %206 }
 0x277   : > { %v208_v31 = vcvt.f32.s32 %v207_v29 }
 0x279   : > { %v211_v32 = vadd.s32 %v210_v30, %v208_v31 }
 0x27b   : > { %218 = vst.msk [vmem:[%s810_s28] sm:$0xff] %vm216_vm6, %v211_v32  ;;  %vm219_vm8 = vcmp.eq.s32.totalorder %v800_v16, %v211_v32 }
 0x27c   : > { %v220_v33 = vsel %vm219_vm8, 2147483648, %v178_v3 }
 0x27d   : > { %221 = vst.msk [vmem:[#allocation2] sm:$0xff] %vm179_vm2, %v220_v33 }
 0x284   : > { %v222_v34 = vld [vmem:[#allocation2] sm:$0xff] }
 0x285   : > { %v223_v35 = vsel %vm179_vm2, %v222_v34, 2147483648 }
 0x286   : > { %v225_v36 = vshra.s32 %v223_v35, 16  ;;  %v224_v38 = vand.u32 65535, %v223_v35 }
 0x288   : > { %v227_v37 = vcvt.s32.f32 %v225_v36  ;;  %v226_v40 = vcvt.s32.f32 %v224_v38 }
 0x28a   : > { %228 = vmax.xlane.f32.xlu0 %v227_v37 }
 0x313   : > { %v229_v39 = vpop.xlane.xlu0 %228 }
 0x314   : > { %vm230_vm9 = vcmp.eq.f32.partialorder %v227_v37, %v229_v39  ;;  %v235_v42 = vcvt.f32.s32 %v229_v39 }
 0x315   : > { %v231_v41 = vsel %vm230_vm9, %v226_v40, -inf  ;;  %vm345_vm9 = vcmask 31768  }
 0x316   : > { %232 = vmax.xlane.f32.xlu1 %v231_v41  ;;  %v236_v44 = vshll.u32 %v235_v42, 16 }
 0x39f   : > { %v233_v43 = vpop.xlane.xlu1 %232 }
 0x3a0   : > { %v234_v45 = vcvt.f32.s32 %v233_v43 }
 0x3a2   : > { %v237_v46 = vadd.s32 %v236_v44, %v234_v45 }
 0x3a4   : > { %vm255_vm10 = vcmp.ge.s32.totalorder %v237_v46, 0  ;;  %v256_v47 = vxor.u32 2147483647, %v237_v46  ;;  %vm238_vm11 = vcmp.eq.s32.totalorder %v222_v34, %v237_v46 }
 0x3a5   : > { %v239_v48 = vsel %vm238_vm11, %v800_v16, 32 }
 0x3a6   : > { %v257_v49 = vsel %vm255_vm10, %v237_v46, %v256_v47  ;;  %v240_v50 = vsel %vm179_vm2, %v239_v48, 2147483647 }
 0x3a7   : > { %v242_v51 = vshra.s32 %v240_v50, 16  ;;  %260 = vst.msk [vmem:[%s805_s20] sm:$0xff] %vm259_vm12, %v257_v49  ;;  %v241_v53 = vand.u32 65535, %v240_v50 }
 0x3a9   : > { %v244_v52 = vcvt.s32.f32 %v242_v51  ;;  %v243_v55 = vcvt.s32.f32 %v241_v53 }
 0x3ab   : > { %245 = vmin.xlane.f32.xlu0 %v244_v52 }
 0x434   : > { %v246_v54 = vpop.xlane.xlu0 %245 }
 0x435   : > { %vm247_vm13 = vcmp.eq.f32.partialorder %v244_v52, %v246_v54  ;;  %v252_v57 = vcvt.f32.s32 %v246_v54 }
 0x436   : > { %v248_v56 = vsel %vm247_vm13, %v243_v55, inf }
 0x437   : > { %249 = vmin.xlane.f32.xlu1 %v248_v56  ;;  %v253_v59 = vshll.u32 %v252_v57, 16 }
 0x4c0   : > { %v250_v58 = vpop.xlane.xlu1 %249 }
 0x4c1   : > { %v251_v60 = vcvt.f32.s32 %v250_v58 }
 0x4c3   : > { %v254_v61 = vadd.s32 %v253_v59, %v251_v60 }
 0x4c5   : > { %261 = vst.msk [vmem:[%s810_s28] sm:$0xff] %vm259_vm12, %v254_v61  ;;  %vm262_vm14 = vcmp.eq.s32.totalorder %v800_v16, %v254_v61 }
 0x4c6   : > { %v263_v62 = vsel %vm262_vm14, 2147483648, %v222_v34 }
 0x4c7   : > { %264 = vst.msk [vmem:[#allocation2] sm:$0xff] %vm179_vm2, %v263_v62 }
 0x4ce   : > { %v265_v63 = vld [vmem:[#allocation2] sm:$0xff] }
 0x4cf   : > { %v266_v0 = vsel %vm179_vm2, %v265_v63, 2147483648 }
 0x4d0   : > { %v268_v1 = vshra.s32 %v266_v0, 16  ;;  %v267_v3 = vand.u32 65535, %v266_v0 }
 0x4d2   : > { %v270_v2 = vcvt.s32.f32 %v268_v1  ;;  %v269_v5 = vcvt.s32.f32 %v267_v3 }
 0x4d4   : > { %271 = vmax.xlane.f32.xlu0 %v270_v2 }
 0x55d   : > { %v272_v4 = vpop.xlane.xlu0 %271 }
 0x55e   : > { %vm273_vm15 = vcmp.eq.f32.partialorder %v270_v2, %v272_v4  ;;  %v278_v7 = vcvt.f32.s32 %v272_v4 }
 0x55f   : > { %v274_v6 = vsel %vm273_vm15, %v269_v5, -inf }
 0x560   : > { %275 = vmax.xlane.f32.xlu1 %v274_v6  ;;  %v279_v9 = vshll.u32 %v278_v7, 16 }
 0x5e9   : > { %v276_v8 = vpop.xlane.xlu1 %275 }
 0x5ea   : > { %v277_v10 = vcvt.f32.s32 %v276_v8 }
 0x5ec   : > { %v280_v11 = vadd.s32 %v279_v9, %v277_v10 }
 0x5ee   : > { %vm298_vm0 = vcmp.ge.s32.totalorder %v280_v11, 0  ;;  %v299_v12 = vxor.u32 2147483647, %v280_v11  ;;  %vm281_vm1 = vcmp.eq.s32.totalorder %v265_v63, %v280_v11 }
 0x5ef   : > { %v282_v13 = vsel %vm281_vm1, %v800_v16, 32 }
 0x5f0   : > { %v300_v14 = vsel %vm298_vm0, %v280_v11, %v299_v12  ;;  %v283_v15 = vsel %vm179_vm2, %v282_v13, 2147483647 }
 0x5f1   : > { %v285_v17 = vshra.s32 %v283_v15, 16  ;;  %303 = vst.msk [vmem:[%s805_s20] sm:$0xff] %vm302_vm3, %v300_v14  ;;  %v284_v19 = vand.u32 65535, %v283_v15 }
 0x5f3   : > { %v287_v18 = vcvt.s32.f32 %v285_v17  ;;  %v286_v21 = vcvt.s32.f32 %v284_v19 }
 0x5f5   : > { %288 = vmin.xlane.f32.xlu0 %v287_v18 }
 0x67e   : > { %v289_v20 = vpop.xlane.xlu0 %288 }
 0x67f   : > { %vm290_vm4 = vcmp.eq.f32.partialorder %v287_v18, %v289_v20  ;;  %v295_v23 = vcvt.f32.s32 %v289_v20 }
 0x680   : > { %v291_v22 = vsel %vm290_vm4, %v286_v21, inf }
 0x681   : > { %292 = vmin.xlane.f32.xlu1 %v291_v22  ;;  %v296_v25 = vshll.u32 %v295_v23, 16 }
 0x70a   : > { %v293_v24 = vpop.xlane.xlu1 %292 }
 0x70b   : > { %v294_v26 = vcvt.f32.s32 %v293_v24 }
 0x70d   : > { %v297_v27 = vadd.s32 %v296_v25, %v294_v26 }
 0x70f   : > { %vm305_vm5 = vcmp.eq.s32.totalorder %v800_v16, %v297_v27  ;;  %304 = vst.msk [vmem:[%s810_s28] sm:$0xff] %vm302_vm3, %v297_v27 }
 0x710   : > { %v306_v28 = vsel %vm305_vm5, 2147483648, %v265_v63 }
 0x711   : > { %307 = vst.msk [vmem:[#allocation2] sm:$0xff] %vm179_vm2, %v306_v28 }
 0x718   : > { %v308_v29 = vld [vmem:[#allocation2] sm:$0xff] }
 0x719   : > { %v309_v30 = vsel %vm179_vm2, %v308_v29, 2147483648 }
 0x71a   : > { %v311_v31 = vshra.s32 %v309_v30, 16  ;;  %v310_v33 = vand.u32 65535, %v309_v30 }
 0x71c   : > { %v313_v32 = vcvt.s32.f32 %v311_v31  ;;  %v312_v35 = vcvt.s32.f32 %v310_v33 }
 0x71e   : > { %314 = vmax.xlane.f32.xlu0 %v313_v32 }
 0x7a7   : > { %v315_v34 = vpop.xlane.xlu0 %314 }
 0x7a8   : > { %vm316_vm6 = vcmp.eq.f32.partialorder %v313_v32, %v315_v34  ;;  %v321_v37 = vcvt.f32.s32 %v315_v34 }
 0x7a9   : > { %v317_v36 = vsel %vm316_vm6, %v312_v35, -inf }
 0x7aa   : > { %318 = vmax.xlane.f32.xlu1 %v317_v36  ;;  %v322_v39 = vshll.u32 %v321_v37, 16 }
 0x833   : > { %v319_v38 = vpop.xlane.xlu1 %318 }
 0x834   : > { %v320_v40 = vcvt.f32.s32 %v319_v38 }
 0x836   : > { %v323_v41 = vadd.s32 %v322_v39, %v320_v40 }
 0x838   : > { %vm341_vm7 = vcmp.ge.s32.totalorder %v323_v41, 0  ;;  %v342_v42 = vxor.u32 2147483647, %v323_v41  ;;  %vm324_vm8 = vcmp.eq.s32.totalorder %v308_v29, %v323_v41 }
 0x839   : > { %v325_v43 = vsel %vm324_vm8, %v800_v16, 32 }
 0x83a   : > { %v343_v44 = vsel %vm341_vm7, %v323_v41, %v342_v42  ;;  %v326_v45 = vsel %vm179_vm2, %v325_v43, 2147483647 }
 0x83b   : > { %v328_v46 = vshra.s32 %v326_v45, 16  ;;  %346 = vst.msk [vmem:[%s805_s20] sm:$0xff] %vm345_vm9, %v343_v44  ;;  %v327_v48 = vand.u32 65535, %v326_v45 }
 0x83d   : > { %v330_v47 = vcvt.s32.f32 %v328_v46  ;;  %v329_v50 = vcvt.s32.f32 %v327_v48 }
 0x83f   : > { %331 = vmin.xlane.f32.xlu0 %v330_v47 }
 0x8c8   : > { %v332_v49 = vpop.xlane.xlu0 %331 }
 0x8c9   : > { %vm333_vm10 = vcmp.eq.f32.partialorder %v330_v47, %v332_v49 }
 0x8ca   : > { %v334_v51 = vsel %vm333_vm10, %v329_v50, inf }
 0x8cb   : > { %335 = vmin.xlane.f32.xlu1 %v334_v51 }
 0x8cc   : > { %589 = shalt.err (!%p586_p10)
}
 0x8cd   : > { %s590_s19 = scalar_lea.hbm %s365_s5, 128  ;;  %s594_s26 = scalar_lea.hbm %s899_s1, 256 }
 0x8ce   : > { %p591_p2 = scmp.ne.s32.totalorder %s365_s5, %s590_s19  ;;  %p595_p7 = scmp.lt.s32.totalorder %s365_s5, %s899_s1 }
 0x8cf   : > { %p596_p0 = scmp.lt.s32.totalorder %s594_s26, %s590_s19 }
 0x8d0   : > { %p592_p4 = pnand %p591_p2, %p911_p12 }
 0x8d1   : > { %p597_p6 = por %p596_p0, %p595_p7 }
 0x8d2   : > { %p593_p9 = pneg %p592_p4 }
 0x8d4   : > { %p598_p11 = pnand %p597_p6, %p593_p9 }
 0x8d6   : > { %601 = shalt.err (!%p598_p11)
}
 0x8d7   : > { %499 = dma.vmem_to_hbm [thread:$0]  (%p911_p12), %s368_s6, 128, %s365_s5, %s349_s7   ;;  %v338_v16 = vcvt.f32.s32 %v332_v49 }
 0x8d8   : > { %s380_s20 = sshll.u32 %s810_s28, 4  ;;  %s378_s8 = scalar_lea.hbm %s900_s2, %s493_s30  ;;  %s381_s20 = int_to_ptr.vmem [resolvable:$true] %s380_s20 }
 0x8d9   : > { %v339_v53 = vshll.u32 %v338_v16, 16  ;;  %s354_s14 = scalar_lea.sflag [#allocation8], %s788_s25  ;;  %s602_s16 = scalar_lea.vmem %s381_s20, 128 }
 0x8da   : > { %p603_p13 = scmp.ne.s32.totalorder %s381_s20, %s602_s16  ;;  %s674_s5 = smov [#allocation7]  }
 0x8db   : > { %s606_s6 = sshll.u32 %s674_s5, 4  ;;  %s607_s6 = int_to_ptr.vmem [resolvable:$false] %s606_s6 }
 0x8dc   : > { %p604_p1 = pnand %p603_p13, %p911_p12  ;;  %s608_s7 = scalar_lea.vmem %s607_s6, 256 }
 0x8dd   : > { %p609_p5 = scmp.lt.s32.totalorder %s381_s20, %s607_s6  ;;  %p610_p8 = scmp.lt.s32.totalorder %s608_s7, %s602_s16 }
 0x8de   : > { %p605_p3 = pneg %p604_p1 }
 0x8df   : > { %p611_p10 = por %p610_p8, %p609_p5 }
 0x8e1   : > { %p612_p2 = pnand %p611_p10, %p605_p3 }
 0x954   : > { %v336_v52 = vpop.xlane.xlu1 %335 }
 0x955   : > { %v337_v54 = vcvt.f32.s32 %v336_v52 }
 0x957   : > { %v340_v55 = vadd.s32 %v339_v53, %v337_v54 }
 0x959   : > { %347 = vst.msk [vmem:[%s810_s28] sm:$0xff] %vm345_vm9, %v340_v55 }
 0x95a   : > { %615 = shalt.err (!%p612_p2)
}
 0x95b   : > { %s616_s13 = scalar_lea.hbm %s378_s8, 128  ;;  %s620_s30 = scalar_lea.hbm %s900_s2, 256 }
 0x95c   : > { %p617_p4 = scmp.ne.s32.totalorder %s378_s8, %s616_s13  ;;  %p621_p0 = scmp.lt.s32.totalorder %s378_s8, %s900_s2 }
 0x95d   : > { %p622_p6 = scmp.lt.s32.totalorder %s620_s30, %s616_s13 }
 0x95e   : > { %p618_p9 = pnand %p617_p4, %p911_p12 }
 0x95f   : > { %p623_p11 = por %p622_p6, %p621_p0 }
 0x960   : > { %p619_p7 = pneg %p618_p9 }
 0x962   : > { %p624_p13 = pnand %p623_p11, %p619_p7 }
 0x964   : > { %627 = shalt.err (!%p624_p13)
}
 0x965   : > { %500 = dma.vmem_to_hbm [thread:$0]  (%p911_p12), %s381_s20, 128, %s378_s8, %s354_s14  }
 0x966 PF: > { %s392_s23 = sand.u32 1, %s658_s9   ;;  %p912_p1 = scmp.ne.s32.totalorder %s906_s22, 0 }
 0x967   : > { %p913_p3 = scmp.ge.s32.totalorder %s670_s12, 2  ;;  %s393_s24 = scalar_lea.sflag [#allocation5], %s392_s23 }
 0x969   : > { %p508_p5 = pnand %p913_p3, %p912_p1 }
 0x96b   : > { %p509_p8 = pneg %p508_p5 }
 0x96d   : > { %649 = dma.done.wait (%p509_p8), %s393_s24, 128  }
 0x96e   : > { %651 = vsyncadd (%p509_p8), %s393_s24, 4294967168  ;;  %s402_s26 = scalar_lea.sflag [#allocation8], %s392_s23 }
 0x96f   : > { %653 = dma.done.wait (%p509_p8), %s402_s26, 128  }
 0x970   : > { %655 = vsyncadd (%p509_p8), %s402_s26, 4294967168  ;;  %p19_p12 = scmp.ge.s32.totalorder %s715_s15, 4   ;;  %s914_s9 = smov %s662_s10 }
 0x971   : > { %s915_s10 = smov %s666_s11  ;;  %s916_s11 = smov %s727_s18 }
 0x972   : > { %s917_s12 = smov %s715_s15  ;;  %21 = sbr.rel (!%p19_p12) target bundleno = 7 (0x7), region = 86 }
 0x977   :  { %407 = vsyncpa [#allocation4], 1 }
 0x978   :  { %409 = vsyncpa [#allocation4 + $0x1], 1 }
 0x979   :  { %410 = vsyncpa [#allocation5], 1 }
 0x97a   :  { %412 = vsyncpa [#allocation5 + $0x1], 1 }
 0x97b   :  { %413 = vsyncpa [#allocation8], 1 }
 0x97c   :  { %415 = vsyncpa [#allocation8 + $0x1], 1 }

</bundles_post_ra>
